<compile_context>
chip_gen: v6e
topology: v6e:2x2x1
jax: 0.10.0
libtpu: 0.0.40
codegen_flags: <defaults>
</compile_context>

<pallas_src>
import functools

import jax
import jax.numpy as jnp
from jax.experimental import pallas as pl
from jax.experimental.pallas import tpu as pltpu

D_IN, D_H, D_OUT = 57, 200, 2
D_IN_PAD, D_OUT_PAD = 64, 128  # lane/sublane-friendly padded dims


def mlp_kernel(x_ref, w1_ref, b1_ref, w2_ref, b2_ref, w3_ref, b3_ref, o_ref):
    # bf16 MXU operands, f32 accumulation, f32 elementwise (bias + ReLU).
    h = jnp.dot(x_ref[...], w1_ref[...], preferred_element_type=jnp.float32)
    h = jnp.maximum(h + b1_ref[...], 0.0)

    h = jnp.dot(h.astype(jnp.bfloat16), w2_ref[...], preferred_element_type=jnp.float32)
    h = jnp.maximum(h + b2_ref[...], 0.0)

    h = jnp.dot(h.astype(jnp.bfloat16), w3_ref[...], preferred_element_type=jnp.float32)
    o_ref[...] = jnp.maximum(h + b3_ref[...], 0.0).astype(o_ref.dtype)


@functools.partial(jax.jit, static_argnames=("tile_batch",))
def mlp_forward(x, params, tile_batch=512):
    """x: (batch, 57) float32 -> (batch, 2) float32 (matches PyTorch module)."""
    w1, b1, w2, b2, w3, b3 = params
    batch = x.shape[0]

    # Batch tile: multiple of 8, capped at tile_batch, no over-padding tiny batches.
    tb = min(tile_batch, max(8, ((batch + 7) // 8) * 8))
    padded_batch = pl.cdiv(batch, tb) * tb
    grid = (padded_batch // tb,)

    # --- wrapper-side layout plumbing: zero-pad hostile dims, bf16 weights/acts ---
    x_p = (
        jnp.zeros((padded_batch, D_IN_PAD), jnp.float32)
        .at[:batch, :D_IN]
        .set(x)
        .astype(jnp.bfloat16)
    )

    w1_p = (
        jnp.zeros((D_IN_PAD, D_H), jnp.float32).at[:D_IN, :].set(w1).astype(jnp.bfloat16)
    )
    w2_p = w2.astype(jnp.bfloat16)
    w3_p = (
        jnp.zeros((D_H, D_OUT_PAD), jnp.float32).at[:, :D_OUT].set(w3).astype(jnp.bfloat16)
    )
    b3_p = jnp.zeros((1, D_OUT_PAD), jnp.float32).at[:, :D_OUT].set(b3)

    resident = lambda i: (0, 0)  # weights/biases: same block every grid step

    out = pl.pallas_call(
        mlp_kernel,
        out_shape=jax.ShapeDtypeStruct((padded_batch, D_OUT_PAD), jnp.float32),
        grid=grid,
        in_specs=[
            pl.BlockSpec((tb, D_IN_PAD), lambda i: (i, 0)),   # x: streamed per tile (bf16)
            pl.BlockSpec((D_IN_PAD, D_H), resident),          # w1 (bf16, padded rows)
            pl.BlockSpec((1, D_H), resident),                 # b1 (f32)
            pl.BlockSpec((D_H, D_H), resident),               # w2 (bf16)
            pl.BlockSpec((1, D_H), resident),                 # b2 (f32)
            pl.BlockSpec((D_H, D_OUT_PAD), resident),         # w3 (bf16, padded cols)
            pl.BlockSpec((1, D_OUT_PAD), resident),           # b3 (f32, padded cols)
        ],
        out_specs=pl.BlockSpec((tb, D_OUT_PAD), lambda i: (i, 0)),
        compiler_params=pltpu.CompilerParams(
            dimension_semantics=("parallel",),   # v7x: shard batch over both TCs
        ),
    )(x_p, w1_p, b1, w2_p, b2, w3_p, b3_p)

    return out[:batch, :D_OUT]


def init_params(key):
    """Deterministic init mimicking PyTorch nn.Linear default U[-1/sqrt(fan_in), +]."""
    keys = jax.random.split(key, 6)

    def linear(kw, kb, fan_in, fan_out):
        bound = 1.0 / jnp.sqrt(fan_in)
        w = jax.random.uniform(kw, (fan_in, fan_out), jnp.float32, -bound, bound)
        b = jax.random.uniform(kb, (1, fan_out), jnp.float32, -bound, bound)
        return w, b

    w1, b1 = linear(keys[0], keys[1], D_IN, D_H)
    w2, b2 = linear(keys[2], keys[3], D_H, D_H)
    w3, b3 = linear(keys[4], keys[5], D_H, D_OUT)
    return (w1, b1, w2, b2, w3, b3)


def _reference(x, params):
    # Full-f32 reference of the PyTorch module (ReLU after every Linear,
    # including the last one, exactly as in the nn.Sequential spec).
    w1, b1, w2, b2, w3, b3 = params
    h = jnp.maximum(x @ w1 + b1, 0.0)
    h = jnp.maximum(h @ w2 + b2, 0.0)
    return jnp.maximum(h @ w3 + b3, 0.0)


if __name__ == "__main__":
    # TODO(synk): nn.CrossEntropyLoss / Adam training step are host-side training
    # logic, not part of the forward pass; only forward() is implemented here.
    key = jax.random.PRNGKey(0)
    k_params, k_x1, k_x2 = jax.random.split(key, 3)
    params = init_params(k_params)

    # Small primary test (single grid step).
    x_small = jax.random.normal(k_x1, (8, D_IN), dtype=jnp.float32)
    out_small = jax.block_until_ready(mlp_forward(x_small, params))

    # Secondary test exercising multiple grid steps + batch padding.
    x_multi = jax.random.normal(k_x2, (40, D_IN), dtype=jnp.float32)
    out_multi = jax.block_until_ready(mlp_forward(x_multi, params, tile_batch=16))

    ref_small = _reference(x_small, params)
    ref_multi = _reference(x_multi, params)

    assert out_small.shape == (8, D_OUT)
    assert out_multi.shape == (40, D_OUT)
    # bf16 MXU operands -> compare against f32 reference with loose tolerance.
    assert jnp.allclose(out_small, ref_small, atol=2e-2, rtol=2e-2)
    assert jnp.allclose(out_multi, ref_multi, atol=2e-2, rtol=2e-2)

    print("KERNEL_OK")
</pallas_src>

<mosaic_0001>
module attributes {stable_mosaic.version = 11 : i64} {
  func.func @mlp_kernel(%arg0: i32, %arg1: memref<8x64xbf16, #tpu.memory_space<vmem>>, %arg2: memref<64x200xbf16, #tpu.memory_space<vmem>>, %arg3: memref<1x200xf32, #tpu.memory_space<vmem>>, %arg4: memref<200x200xbf16, #tpu.memory_space<vmem>>, %arg5: memref<1x200xf32, #tpu.memory_space<vmem>>, %arg6: memref<200x128xbf16, #tpu.memory_space<vmem>>, %arg7: memref<1x128xf32, #tpu.memory_space<vmem>>, %arg8: memref<8x128xf32, #tpu.memory_space<vmem>>) attributes {dimension_semantics = [#tpu.dimension_semantics<parallel>], iteration_bounds = array<i64: 1>, scalar_prefetch = 0 : i64, scratch_operands = 0 : i64, tpu.core_type = #tpu.core_type<tc>, window_params = [{transform_indices = @transform_0, window_bounds = array<i64: 8, 64>}, {pipeline_mode = #tpu.pipeline_mode<synchronous>, transform_indices = @transform_1, window_bounds = array<i64: 64, 200>}, {pipeline_mode = #tpu.pipeline_mode<synchronous>, transform_indices = @transform_2, window_bounds = array<i64: 1, 200>}, {pipeline_mode = #tpu.pipeline_mode<synchronous>, transform_indices = @transform_3, window_bounds = array<i64: 200, 200>}, {pipeline_mode = #tpu.pipeline_mode<synchronous>, transform_indices = @transform_4, window_bounds = array<i64: 1, 200>}, {pipeline_mode = #tpu.pipeline_mode<synchronous>, transform_indices = @transform_5, window_bounds = array<i64: 200, 128>}, {pipeline_mode = #tpu.pipeline_mode<synchronous>, transform_indices = @transform_6, window_bounds = array<i64: 1, 128>}, {transform_indices = @transform_7, window_bounds = array<i64: 8, 128>}]} {
    %c0 = arith.constant 0 : index
    %c0_0 = arith.constant 0 : index
    %0 = vector.load %arg1[%c0, %c0_0] : memref<8x64xbf16, #tpu.memory_space<vmem>>, vector<8x64xbf16>
    %c0_1 = arith.constant 0 : index
    %c0_2 = arith.constant 0 : index
    %1 = vector.load %arg2[%c0_1, %c0_2] : memref<64x200xbf16, #tpu.memory_space<vmem>>, vector<64x200xbf16>
    %cst = arith.constant dense<0.000000e+00> : vector<8x200xf32>
    %2 = tpu.matmul %0, %1, %cst {dimension_numbers = #tpu.dot_dimension_numbers<[1], [0], [0], [1], [0, 0, 1, 1], [], []>} : vector<8x64xbf16>, vector<64x200xbf16>, vector<8x200xf32> -> vector<8x200xf32>
    %c0_3 = arith.constant 0 : index
    %c0_4 = arith.constant 0 : index
    %3 = vector.load %arg3[%c0_3, %c0_4] : memref<1x200xf32, #tpu.memory_space<vmem>>, vector<1x200xf32>
    %4 = vector.broadcast %3 : vector<1x200xf32> to vector<8x200xf32>
    %5 = arith.addf %2, %4 : vector<8x200xf32>
    %cst_5 = arith.constant 0.000000e+00 : f32
    %6 = vector.broadcast %cst_5 : f32 to vector<8x200xf32>
    %7 = arith.maximumf %5, %6 : vector<8x200xf32>
    %8 = arith.truncf %7 : vector<8x200xf32> to vector<8x200xbf16>
    %c0_6 = arith.constant 0 : index
    %c0_7 = arith.constant 0 : index
    %9 = vector.load %arg4[%c0_6, %c0_7] : memref<200x200xbf16, #tpu.memory_space<vmem>>, vector<200x200xbf16>
    %cst_8 = arith.constant dense<0.000000e+00> : vector<8x200xf32>
    %10 = tpu.matmul %8, %9, %cst_8 {dimension_numbers = #tpu.dot_dimension_numbers<[1], [0], [0], [1], [0, 0, 1, 1], [], []>} : vector<8x200xbf16>, vector<200x200xbf16>, vector<8x200xf32> -> vector<8x200xf32>
    %c0_9 = arith.constant 0 : index
    %c0_10 = arith.constant 0 : index
    %11 = vector.load %arg5[%c0_9, %c0_10] : memref<1x200xf32, #tpu.memory_space<vmem>>, vector<1x200xf32>
    %12 = vector.broadcast %11 : vector<1x200xf32> to vector<8x200xf32>
    %13 = arith.addf %10, %12 : vector<8x200xf32>
    %cst_11 = arith.constant 0.000000e+00 : f32
    %14 = vector.broadcast %cst_11 : f32 to vector<8x200xf32>
    %15 = arith.maximumf %13, %14 : vector<8x200xf32>
    %16 = arith.truncf %15 : vector<8x200xf32> to vector<8x200xbf16>
    %c0_12 = arith.constant 0 : index
    %c0_13 = arith.constant 0 : index
    %17 = vector.load %arg6[%c0_12, %c0_13] : memref<200x128xbf16, #tpu.memory_space<vmem>>, vector<200x128xbf16>
    %cst_14 = arith.constant dense<0.000000e+00> : vector<8x128xf32>
    %18 = tpu.matmul %16, %17, %cst_14 {dimension_numbers = #tpu.dot_dimension_numbers<[1], [0], [0], [1], [0, 0, 1, 1], [], []>} : vector<8x200xbf16>, vector<200x128xbf16>, vector<8x128xf32> -> vector<8x128xf32>
    %c0_15 = arith.constant 0 : index
    %c0_16 = arith.constant 0 : index
    %19 = vector.load %arg7[%c0_15, %c0_16] : memref<1x128xf32, #tpu.memory_space<vmem>>, vector<1x128xf32>
    %20 = vector.broadcast %19 : vector<1x128xf32> to vector<8x128xf32>
    %21 = arith.addf %18, %20 : vector<8x128xf32>
    %cst_17 = arith.constant 0.000000e+00 : f32
    %22 = vector.broadcast %cst_17 : f32 to vector<8x128xf32>
    %23 = arith.maximumf %21, %22 : vector<8x128xf32>
    %c0_18 = arith.constant 0 : index
    %c0_19 = arith.constant 0 : index
    %24 = vector.load %arg8[%c0_18, %c0_19] : memref<8x128xf32, #tpu.memory_space<vmem>>, vector<8x128xf32>
    tpu.vector_store %arg8[%c0_18, %c0_19], %23 {strides = array<i32>} : memref<8x128xf32, #tpu.memory_space<vmem>>, vector<8x128xf32>,
    return
  }
  func.func @transform_0(%arg0: i32) -> (i32, i32) {
    %c0_i32 = arith.constant 0 : i32
    %c0_i32_0 = arith.constant 0 : i32
    return %arg0, %c0_i32 : i32, i32
  }
  func.func @transform_1(%arg0: i32) -> (i32, i32) {
    %c0_i32 = arith.constant 0 : i32
    %c0_i32_0 = arith.constant 0 : i32
    %c0_i32_1 = arith.constant 0 : i32
    return %c0_i32, %c0_i32_0 : i32, i32
  }
  func.func @transform_2(%arg0: i32) -> (i32, i32) {
    %c0_i32 = arith.constant 0 : i32
    %c0_i32_0 = arith.constant 0 : i32
    %c0_i32_1 = arith.constant 0 : i32
    return %c0_i32, %c0_i32_0 : i32, i32
  }
  func.func @transform_3(%arg0: i32) -> (i32, i32) {
    %c0_i32 = arith.constant 0 : i32
    %c0_i32_0 = arith.constant 0 : i32
    %c0_i32_1 = arith.constant 0 : i32
    return %c0_i32, %c0_i32_0 : i32, i32
  }
  func.func @transform_4(%arg0: i32) -> (i32, i32) {
    %c0_i32 = arith.constant 0 : i32
    %c0_i32_0 = arith.constant 0 : i32
    %c0_i32_1 = arith.constant 0 : i32
    return %c0_i32, %c0_i32_0 : i32, i32
  }
  func.func @transform_5(%arg0: i32) -> (i32, i32) {
    %c0_i32 = arith.constant 0 : i32
    %c0_i32_0 = arith.constant 0 : i32
    %c0_i32_1 = arith.constant 0 : i32
    return %c0_i32, %c0_i32_0 : i32, i32
  }
  func.func @transform_6(%arg0: i32) -> (i32, i32) {
    %c0_i32 = arith.constant 0 : i32
    %c0_i32_0 = arith.constant 0 : i32
    %c0_i32_1 = arith.constant 0 : i32
    return %c0_i32, %c0_i32_0 : i32, i32
  }
  func.func @transform_7(%arg0: i32) -> (i32, i32) {
    %c0_i32 = arith.constant 0 : i32
    %c0_i32_0 = arith.constant 0 : i32
    return %arg0, %c0_i32 : i32, i32
  }
}

</mosaic_0001>

<bundles_post_ra>
// kernel: mlp_forward.1
= control target key start
LH: loop header
LB: loop body
LE: loop exit
PB: predicated region body
PF: predicated region fallthrough
CT: control target
= control target key end

     0   :  { %v630_v1 = vmov 0   ;;  %vm88_vm0 = vcmask 523264   ;;  %vm303_vm1 = vcmask 1043456   ;;  %v38_v50 = vlaneseq  ;;  %s843_s1 = inlined_call_operand.vmem [shape: bf16[64,200], index: 1, kind: input, shape index: {}]   ;;  %s844_s3 = inlined_call_operand.vmem [shape: bf16[200,200], index: 3, kind: input, shape index: {}]   ;;  %s845_s0 = inlined_call_operand.vmem [shape: bf16[8,64], index: 0, kind: input, shape index: {}]   ;;  %s846_s5 = inlined_call_operand.vmem [shape: bf16[200,128], index: 5, kind: input, shape index: {}]   ;;  %s847_s2 = inlined_call_operand.vmem [shape: f32[1,200], index: 2, kind: input, shape index: {}]   ;;  %s848_s4 = inlined_call_operand.vmem [shape: f32[1,200], index: 4, kind: input, shape index: {}]   ;;  %s849_s6 = inlined_call_operand.vmem [shape: f32[1,128], index: 6, kind: input, shape index: {}]   ;;  %s850_s7 = inlined_call_operand.vmem [shape: f32[8,128], index: 7, kind: output, shape index: {}]  }
   0x1   :  { %v567_v0 = vld [vmem:[%s843_s1 + $0x34] ss:$8 sps:$4 sm:$0xff]   ;;  %124 = vmatprep.mubr.bf16.mxu0 %v630_v1  ;;  %v569_v2 = vld [vmem:[%s843_s1 + $0x30] ss:$8 sps:$4 sm:$0xff]   ;;  %v570_v3 = vld [vmem:[%s843_s1 + $0x24] ss:$8 sps:$4 sm:$0xff]  }
   0x2   :  { %100 = vmatprep.subr.bf16.mxu0 %v567_v0  ;;  %v572_v4 = vld [vmem:[%s843_s1 + $0x20] ss:$8 sps:$4 sm:$0xff]   ;;  %v573_v5 = vld [vmem:[%s843_s1 + $0x14] ss:$8 sps:$4 sm:$0xff]   ;;  %v575_v6 = vld [vmem:[%s843_s1 + $0x10] ss:$8 sps:$4 sm:$0xff]  }
   0x3   :  { %101 = vmatpush1.bf16.msra.mxu0 %v569_v2  ;;  %v579_v7 = vld [vmem:[%s844_s3 + $0x74] ss:$8 sps:$4 sm:$0xff]   ;;  %v581_v8 = vld [vmem:[%s844_s3 + $0x70] ss:$8 sps:$4 sm:$0xff]   ;;  %v582_v9 = vld [vmem:[%s844_s3 + $0x64] ss:$8 sps:$4 sm:$0xff]  }
   0x4   :  { %102 = vmatprep.subr.bf16.mxu0 %v570_v3  ;;  %v576_v10 = vld [vmem:[%s843_s1 + $0x4] ss:$8 sps:$4 sm:$0xff]   ;;  %310 = vmatprep.subr.bf16.mxu1 %v579_v7  ;;  %v584_v11 = vld [vmem:[%s844_s3 + $0x60] ss:$8 sps:$4 sm:$0xff]   ;;  %v585_v12 = vld [vmem:[%s844_s3 + $0x54] ss:$8 sps:$4 sm:$0xff]  }
   0x5   :  { %311 = vmatpush1.bf16.msra.mxu1 %v581_v8  ;;  %v578_v13 = vld [vmem:[%s843_s1] ss:$8 sps:$4 sm:$0xff]   ;;  %v587_v14 = vld [vmem:[%s844_s3 + $0x50] ss:$8 sps:$4 sm:$0xff]   ;;  %v588_v15 = vld [vmem:[%s844_s3 + $0x44] ss:$8 sps:$4 sm:$0xff]  }
   0x6   :  { %312 = vmatprep.subr.bf16.mxu1 %v582_v9  ;;  %v27_v16 = vld [vmem:[%s845_s0] sm:$0xf]  ;;  %v591_v18 = vld [vmem:[%s844_s3 + $0x34] ss:$8 sps:$4 sm:$0xff]   ;;  %v593_v19 = vld [vmem:[%s844_s3 + $0x30] ss:$8 sps:$4 sm:$0xff]  }
   0x7   :  { %103 = vmatpush1.bf16.msra.mxu0 %v572_v4  ;;  %v590_v17 = vld [vmem:[%s844_s3 + $0x40] ss:$8 sps:$4 sm:$0xff]   ;;  %v594_v20 = vld [vmem:[%s844_s3 + $0x24] ss:$8 sps:$4 sm:$0xff]   ;;  %v597_v22 = vld [vmem:[%s844_s3 + $0x14] ss:$8 sps:$4 sm:$0xff]  }
   0x8   :  { %104 = vmatprep.subr.bf16.mxu0 %v573_v5  ;;  %v596_v21 = vld [vmem:[%s844_s3 + $0x20] ss:$8 sps:$4 sm:$0xff]   ;;  %v599_v23 = vld [vmem:[%s844_s3 + $0x10] ss:$8 sps:$4 sm:$0xff]   ;;  %v600_v24 = vld [vmem:[%s844_s3 + $0x4] ss:$8 sps:$4 sm:$0xff]  }
   0x9   :  { %313 = vmatpush1.bf16.msra.mxu1 %v584_v11  ;;  %v161_v25 = vld [vmem:[%s844_s3 + $0xc0] sm:$0xff]  ;;  %v605_v30 = vld [vmem:[%s844_s3 + $0xb4] ss:$8 sps:$4 sm:$0xff]   ;;  %v607_v31 = vld [vmem:[%s844_s3 + $0xb0] ss:$8 sps:$4 sm:$0xff]   ;;  %v39_v51 = vshrl.u32 %v38_v50, 7 }
   0xa   :  { %314 = vmatprep.subr.bf16.mxu1 %v585_v12  ;;  %v602_v26 = vld [vmem:[%s844_s3] ss:$8 sps:$4 sm:$0xff]   ;;  %v548_v27 = vcombine.high %v161_v25, %v161_v25  ;;  %v547_v28 = vcombine.low %v161_v25, %v161_v25  ;;  %v608_v32 = vld [vmem:[%s844_s3 + $0xa4] ss:$8 sps:$4 sm:$0xff]   ;;  %v611_v34 = vld [vmem:[%s844_s3 + $0x94] ss:$8 sps:$4 sm:$0xff]  }
   0xb   :  { %105 = vmatpush1.bf16.msra.mxu0 %v575_v6  ;;  %v610_v33 = vld [vmem:[%s844_s3 + $0xa0] ss:$8 sps:$4 sm:$0xff]   ;;  %v613_v35 = vld [vmem:[%s844_s3 + $0x90] ss:$8 sps:$4 sm:$0xff]   ;;  %v614_v36 = vld [vmem:[%s844_s3 + $0x84] ss:$8 sps:$4 sm:$0xff]  }
   0xc   :  { %106 = vmatprep.subr.bf16.mxu0 %v576_v10  ;;  %v305_v29 = vsel %vm303_vm1, %v547_v28, 0  ;;  %v616_v37 = vld [vmem:[%s844_s3 + $0x80] ss:$8 sps:$4 sm:$0xff]   ;;  %v617_v38 = vld [vmem:[%s846_s5 + $0x38] sm:$0xff]   ;;  %v618_v39 = vld [vmem:[%s846_s5 + $0x30] sm:$0xff]   ;;  %v40_v52 = vsub.s32 0, %v39_v51 }
   0xd   :  { %315 = vmatpush1.bf16.msra.mxu1 %v587_v14  ;;  %v619_v40 = vld [vmem:[%s846_s5 + $0x28] sm:$0xff]   ;;  %v620_v41 = vld [vmem:[%s846_s5 + $0x20] sm:$0xff]   ;;  %v621_v42 = vld [vmem:[%s846_s5 + $0x18] sm:$0xff]   ;;  %v44_v54 = vsub.s32 1, %v39_v51  ;;  %vm299_vm2 = vcmask 588800  }
   0xe   :  { %316 = vmatprep.subr.bf16.mxu1 %v588_v15  ;;  %v622_v43 = vld [vmem:[%s846_s5 + $0x10] sm:$0xff]   ;;  %v623_v44 = vld [vmem:[%s846_s5 + $0x8] sm:$0xff]   ;;  %v624_v45 = vld [vmem:[%s846_s5] sm:$0xff]  }
   0xf   :  { %107 = vmatpush1.bf16.msra.mxu0 %v578_v13  ;;  %v625_v46 = vld [vmem:[%s846_s5 + $0x60] ss:$0 sps:$4 sm:$0xff]   ;;  %v626_v48 = vld [vmem:[%s846_s5 + $0x58] sm:$0xff]   ;;  %v627_v49 = vld [vmem:[%s846_s5 + $0x50] sm:$0xff]  }
  0x10   :  { %468 = vmatprep.subr.bf16.mxu0 %v630_v1  ;;  %v466_v47 = vsel %vm303_vm1, %v625_v46, 0  ;;  %v36_v53 = vld [vmem:[%s847_s2] sm:$0x3]  ;;  %v628_v4 = vld [vmem:[%s846_s5 + $0x48] sm:$0xff]  }
  0x11   :  { %317 = vmatpush1.bf16.msra.mxu1 %v590_v17  ;;  %v41_v55 = vrot.slane %v36_v53, %v40_v52  ;;  %v45_v56 = vrot.slane %v36_v53, %v44_v54  ;;  %v629_v5 = vld [vmem:[%s846_s5 + $0x40] sm:$0xff]  }
  0x12   :  { %522 = vmatmul.mubr.msk.bf16.vlgmr.msra.gmra.mxu0 %vm88_vm0, %v27_v16  ;;  %318 = vmatprep.subr.bf16.mxu1 %v591_v18  ;;  %v162_v6 = vld [vmem:[%s848_s4] sm:$0x3] }
  0x13   :  { %469 = vmatpush1.bf16.msra.mxu0 %v617_v38  ;;  %v167_v7 = vrot.slane %v162_v6, %v40_v52  ;;  %v171_v8 = vrot.slane %v162_v6, %v44_v54  ;;  %v551_v18 = vld [vmem:[%s849_s6] ss:$0 sm:$0xff] }
  0x14   :  { %470 = vmatprep.subr.bf16.mxu0 %v630_v1 }
  0x15   :  { %319 = vmatpush1.bf16.msra.mxu1 %v593_v19 }
  0x16   :  { %320 = vmatprep.subr.bf16.mxu1 %v594_v20 }
  0x17   :  { %471 = vmatpush1.bf16.msra.mxu0 %v618_v39 }
  0x18   :  { %472 = vmatprep.subr.bf16.mxu0 %v630_v1 }
  0x19   :  { %321 = vmatpush1.bf16.msra.mxu1 %v596_v21 }
  0x1a   :  { %322 = vmatprep.subr.bf16.mxu1 %v597_v22 }
  0x1b   :  { %473 = vmatpush1.bf16.msra.mxu0 %v619_v40 }
  0x1c   :  { %474 = vmatprep.subr.bf16.mxu0 %v630_v1 }
  0x1d   :  { %323 = vmatpush1.bf16.msra.mxu1 %v599_v23 }
  0x1e   :  { %324 = vmatprep.subr.bf16.mxu1 %v600_v24 }
  0x1f   :  { %475 = vmatpush1.bf16.msra.mxu0 %v620_v41 }
  0x20   :  { %476 = vmatprep.subr.bf16.mxu0 %v630_v1 }
  0x21   :  { %325 = vmatpush1.bf16.msra.mxu1 %v602_v26 }
  0x22   :  { %549 = vmatprep.subr.msk.bf16.mxu1 %vm303_vm1, %v548_v27 }
  0x23   :  { %477 = vmatpush1.bf16.msra.mxu0 %v621_v42 }
  0x24   :  { %478 = vmatprep.subr.bf16.mxu0 %v630_v1 }
  0x25   :  { %333 = vmatpush2.bf16.msra.mxu1 %v305_v29 }
  0x26   :  { %334 = vmatprep.subr.bf16.mxu1 %v605_v30 }
  0x27   :  { %479 = vmatpush1.bf16.msra.mxu0 %v622_v43 }
  0x28   :  { %480 = vmatprep.subr.bf16.mxu0 %v630_v1 }
  0x29   :  { %335 = vmatpush2.bf16.msra.mxu1 %v607_v31 }
  0x2a   :  { %336 = vmatprep.subr.bf16.mxu1 %v608_v32 }
  0x2b   :  { %481 = vmatpush1.bf16.msra.mxu0 %v623_v44 }
  0x2c   :  { %482 = vmatprep.subr.bf16.mxu0 %v630_v1 }
  0x2d   :  { %337 = vmatpush2.bf16.msra.mxu1 %v610_v33 }
  0x2e   :  { %338 = vmatprep.subr.bf16.mxu1 %v611_v34 }
  0x2f   :  { %483 = vmatpush1.bf16.msra.mxu0 %v624_v45 }
  0x30   :  { %490 = vmatprep.subr.bf16.mxu0 %v630_v1 }
  0x31   :  { %339 = vmatpush2.bf16.msra.mxu1 %v613_v35 }
  0x32   :  { %340 = vmatprep.subr.bf16.mxu1 %v614_v36 }
  0x33   :  { %491 = vmatpush2.bf16.msra.mxu0 %v466_v47 }
  0x34   :  { %492 = vmatprep.subr.bf16.mxu0 %v630_v1 }
  0x35   :  { %341 = vmatpush2.bf16.msra.mxu1 %v616_v37 }
  0x37   :  { %493 = vmatpush2.bf16.msra.mxu0 %v626_v48 }
  0x38   :  { %494 = vmatprep.subr.bf16.mxu0 %v630_v1 }
  0x3b   :  { %495 = vmatpush2.bf16.msra.mxu0 %v627_v49 }
  0x3c   :  { %496 = vmatprep.subr.bf16.mxu0 %v630_v1 }
  0x3f   :  { %497 = vmatpush2.bf16.msra.mxu0 %v628_v4 }
  0x40   :  { %498 = vmatprep.subr.bf16.mxu0 %v630_v1 }
  0x43   :  { %499 = vmatpush2.bf16.msra.mxu0 %v629_v5 }
  0xd2   :  { %v126_v57 = vpop.f32.mrf.mxu0 }
  0xd3   :  { %v127_v58 = vadd.f32 %v126_v57, %v41_v55 }
  0xd4   :  { %v128_v59 = vpop.f32.mrf.mxu0 }
  0xd5   :  { %v129_v60 = vadd.f32 %v128_v59, %v45_v56  ;;  %v133_v61 = vmax.f32 %v127_v58, 0.0 }
  0xd6   :  { %v130_v62 = vpop.f32.mrf.mxu0 }
  0xd7   :  { %v134_v63 = vmax.f32 %v129_v60, 0.0  ;;  %v135_v3 = vpack.c.bf16 %v133_v61, %v133_v61 }
  0xd8   :  { %v131_v0 = vpop.f32.mrf.mxu0 }
  0xd9   :  { %v136_v2 = vpack.c.bf16 %v134_v63, %v134_v63 }
  0xdb   :  { %550 = vmatprep.mubr.msk.bf16.mxu1 %vm299_vm2, %v136_v2 }
  0xdc   :  { %343 = vmatmul.mubr.bf16.vlgmr.msra.gmra.mxu1 %v135_v3 }
 0x19c   :  { %v344_v9 = vpop.f32.mrf.mxu1 }
 0x19d   :  { %v345_v10 = vadd.f32 %v344_v9, %v167_v7 }
 0x19e   :  { %v346_v11 = vpop.f32.mrf.mxu1 }
 0x19f   :  { %v347_v12 = vadd.f32 %v346_v11, %v171_v8  ;;  %v351_v13 = vmax.f32 %v345_v10, 0.0 }
 0x1a0   :  { %v348_v14 = vpop.f32.mrf.mxu1 }
 0x1a1   :  { %v352_v15 = vmax.f32 %v347_v12, 0.0  ;;  %v353_v17 = vpack.c.bf16 %v351_v13, %v351_v13 }
 0x1a2   :  { %v349_v16 = vpop.f32.mrf.mxu1 }
 0x1a3   :  { %v354_v1 = vpack.c.bf16 %v352_v15, %v352_v15 }
 0x1a5   :  { %565 = vmatprep.mubr.msk.bf16.mxu0 %vm299_vm2, %v354_v1 }
 0x1a6   :  { %501 = vmatmul.mubr.bf16.vlgmr.msra.gmra.mxu0 %v353_v17 }
 0x266   :  { %v502_v19 = vpop.f32.mrf.mxu0 }
 0x267   :  { %v503_v20 = vadd.f32 %v551_v18, %v502_v19 }
 0x268   :  { %v504_v21 = vpop.f32.mrf.mxu0 }
 0x269   :  { %v508_v22 = vmax.f32 %v503_v20, 0.0 }
 0x26a   :  { %v505_v23 = vpop.f32.mrf.mxu0 }
 0x26b   :  { %509 = vst [vmem:[%s850_s7] sm:$0xff] %v508_v22 }
 0x26c   :  { %v506_v24 = vpop.f32.mrf.mxu0 }

</bundles_post_ra>
